<compile_context>
chip_gen: v7x
topology: tpu7x:2x2x1
jax: 0.10.0
libtpu: 0.0.40
codegen_flags: <defaults>
</compile_context>

<pallas_src>
import functools
import math

import jax
import jax.numpy as jnp
from jax.experimental import pallas as pl
from jax.experimental.pallas import tpu as pltpu


# ------------------------------ kernel body ------------------------------ #

def addnorm_kernel(x_ref, y_ref, scale_ref, o_ref, *, epsilon, inv_d):
    # x_ref, y_ref, o_ref: (tile_rows, D) blocks; scale_ref: (1, D) broadcast.
    y = y_ref[...].astype(jnp.float32)

    # Fused single-pass statistics: mean and mean-of-squares in one sweep.
    mean = jnp.sum(y, axis=-1, keepdims=True) * inv_d          # (tile, 1)
    mean_sq = jnp.sum(y * y, axis=-1, keepdims=True) * inv_d   # (tile, 1)
    var = jnp.maximum(mean_sq - mean * mean, 0.0)              # unbiased=False
    inv_std = jax.lax.rsqrt(var + epsilon)

    scale = scale_ref[...].astype(jnp.float32)                 # (1, D)
    # out = scale * (y - mean) * inv_std + x   (residual cast lazily)
    out = (y - mean) * inv_std * scale + x_ref[...].astype(jnp.float32)
    o_ref[...] = out.astype(o_ref.dtype)


# ------------------------------ tile sizing ------------------------------ #

# Budget for pipelined buffers + in-kernel f32 temporaries.  Conservative so
# it fits v7x (64 MiB physical VMEM) with headroom; v5e/v6e have 128 MiB.
_VMEM_TILE_BUDGET = 32 * 1024 * 1024
_VMEM_LIMIT_BYTES = 48 * 1024 * 1024
_MAX_TILE_ROWS = 1024  # diminishing returns beyond ~512-1024 rows


def _pick_tile_rows(rows, D, dtype):
    itemsize = jnp.dtype(dtype).itemsize
    if itemsize >= 4:
        align = 8           # f32 sublane packing
    elif itemsize == 2:
        align = 16          # bf16
    else:
        align = 32          # int8 / fp8

    # Per-row VMEM cost: (2 inputs + 1 output) double-buffered in the I/O
    # dtype, plus ~4 full-tile f32 temporaries for the in-kernel math.
    per_row = 3 * 2 * D * itemsize + 4 * D * 4
    tile = max(align, (_VMEM_TILE_BUDGET // per_row) // align * align)
    tile = min(tile, _MAX_TILE_ROWS)
    # Never request a block (much) larger than the whole problem.
    tile = min(tile, pl.cdiv(rows, align) * align)
    # Keep at least 2 grid steps when possible (v7x: 2 TensorCores/chip).
    if rows > align and tile >= rows:
        tile = max(align, pl.cdiv(pl.cdiv(rows, 2), align) * align)
    return max(tile, align)


# ------------------------------ wrapper ----------------------------------- #

def add_norm(x, y, scale, epsilon=1e-6, tile_rows=None):
    """x, y: (..., D); scale: (D,). Returns scale * layernorm(y) + x."""
    assert x.shape == y.shape
    D = x.shape[-1]
    assert scale.shape == (D,)

    orig_shape = x.shape
    rows = math.prod(orig_shape[:-1]) if len(orig_shape) > 1 else 1

    x2 = x.reshape(rows, D)
    y2 = y.reshape(rows, D)
    scale2 = scale.reshape(1, D)

    if tile_rows is None:
        tile_rows = _pick_tile_rows(rows, D, x.dtype)

    # No host-side padding: Pallas pads the ragged last block's loads and
    # masks its out-of-bounds stores; per-row normalization keeps pad rows
    # from affecting valid rows.
    grid = (pl.cdiv(rows, tile_rows),)

    kernel = functools.partial(
        addnorm_kernel, epsilon=float(epsilon), inv_d=float(1.0 / D)
    )

    out = pl.pallas_call(
        kernel,
        out_shape=jax.ShapeDtypeStruct((rows, D), x.dtype),
        grid_spec=pltpu.PrefetchScalarGridSpec(
            num_scalar_prefetch=0,
            grid=grid,
            in_specs=[
                pl.BlockSpec((tile_rows, D), lambda i: (i, 0)),  # X (residual)
                pl.BlockSpec((tile_rows, D), lambda i: (i, 0)),  # Y (normalized)
                pl.BlockSpec((1, D), lambda i: (0, 0)),          # scale (bcast)
            ],
            out_specs=pl.BlockSpec((tile_rows, D), lambda i: (i, 0)),
        ),
        compiler_params=pltpu.CompilerParams(
            dimension_semantics=("parallel",),
            vmem_limit_bytes=_VMEM_LIMIT_BYTES,
        ),
    )(x2, y2, scale2)

    return out.reshape(orig_shape)


# ------------------------------ reference --------------------------------- #

def add_norm_ref(x, y, scale, epsilon=1e-6):
    mean = jnp.mean(y, axis=-1, keepdims=True)
    var = jnp.mean((y - mean) ** 2, axis=-1, keepdims=True)
    normalized = (y - mean) / jnp.sqrt(var + epsilon)
    return scale * normalized + x


if __name__ == "__main__":
    batch, seq, hidden = 2, 8, 32
    key = jax.random.PRNGKey(0)
    kx, ky = jax.random.split(key)

    X = jax.random.normal(kx, (batch, seq, hidden), dtype=jnp.float32)
    Y = jax.random.normal(ky, (batch, seq, hidden), dtype=jnp.float32)

    # Parameter init matches nn.Parameter(torch.ones(feature_dim)).
    scale = jnp.ones((hidden,), dtype=jnp.float32)

    out = add_norm(X, Y, scale, epsilon=1e-6)
    out = jax.block_until_ready(out)

    ref = add_norm_ref(X, Y, scale, epsilon=1e-6)
    assert out.shape == (batch, seq, hidden)
    assert jnp.allclose(out, ref, atol=1e-5, rtol=1e-5), "mismatch vs reference"

    # Exercise a ragged row count (rows not a multiple of tile_rows) to cover
    # the no-pad / pl.cdiv path.
    Xr = jax.random.normal(kx, (3, 5, hidden), dtype=jnp.float32)
    Yr = jax.random.normal(ky, (3, 5, hidden), dtype=jnp.float32)
    out_r = jax.block_until_ready(add_norm(Xr, Yr, scale, tile_rows=8))
    assert jnp.allclose(out_r, add_norm_ref(Xr, Yr, scale), atol=1e-5, rtol=1e-5)

    print("KERNEL_OK")
</pallas_src>

<mosaic_0001>
module attributes {stable_mosaic.version = 11 : i64} {
  func.func @addnorm_kernel(%arg0: i32, %arg1: memref<8x32xf32, #tpu.memory_space<vmem>>, %arg2: memref<8x32xf32, #tpu.memory_space<vmem>>, %arg3: memref<1x32xf32, #tpu.memory_space<vmem>>, %arg4: memref<8x32xf32, #tpu.memory_space<vmem>>) attributes {dimension_semantics = [#tpu.dimension_semantics<parallel>], iteration_bounds = array<i64: 2>, scalar_prefetch = 0 : i64, scratch_operands = 0 : i64, tpu.core_type = #tpu.core_type<tc>, window_params = [{transform_indices = @transform_0, window_bounds = array<i64: 8, 32>}, {transform_indices = @transform_1, window_bounds = array<i64: 8, 32>}, {pipeline_mode = #tpu.pipeline_mode<synchronous>, transform_indices = @transform_2, window_bounds = array<i64: 1, 32>}, {transform_indices = @transform_3, window_bounds = array<i64: 8, 32>}]} {
    %c0 = arith.constant 0 : index
    %c0_0 = arith.constant 0 : index
    %0 = vector.load %arg2[%c0, %c0_0] : memref<8x32xf32, #tpu.memory_space<vmem>>, vector<8x32xf32>
    %cst = arith.constant dense<0.000000e+00> : vector<8xf32>
    %1 = vector.multi_reduction <add>, %0, %cst [1] : vector<8x32xf32> to vector<8xf32>
    %2 = vector.shape_cast %1 : vector<8xf32> to vector<8x1xf32>
    %cst_1 = arith.constant 3.125000e-02 : f32
    %3 = vector.broadcast %cst_1 : f32 to vector<8x1xf32>
    %4 = arith.mulf %2, %3 : vector<8x1xf32>
    %5 = arith.mulf %0, %0 : vector<8x32xf32>
    %cst_2 = arith.constant dense<0.000000e+00> : vector<8xf32>
    %6 = vector.multi_reduction <add>, %5, %cst_2 [1] : vector<8x32xf32> to vector<8xf32>
    %7 = vector.shape_cast %6 : vector<8xf32> to vector<8x1xf32>
    %cst_3 = arith.constant 3.125000e-02 : f32
    %8 = vector.broadcast %cst_3 : f32 to vector<8x1xf32>
    %9 = arith.mulf %7, %8 : vector<8x1xf32>
    %10 = arith.mulf %4, %4 : vector<8x1xf32>
    %11 = arith.subf %9, %10 : vector<8x1xf32>
    %cst_4 = arith.constant 0.000000e+00 : f32
    %12 = vector.broadcast %cst_4 : f32 to vector<8x1xf32>
    %13 = arith.maximumf %11, %12 : vector<8x1xf32>
    %cst_5 = arith.constant 9.99999997E-7 : f32
    %14 = vector.broadcast %cst_5 : f32 to vector<8x1xf32>
    %15 = arith.addf %13, %14 : vector<8x1xf32>
    %16 = math.rsqrt %15 : vector<8x1xf32>
    %c0_6 = arith.constant 0 : index
    %c0_7 = arith.constant 0 : index
    %17 = vector.load %arg3[%c0_6, %c0_7] : memref<1x32xf32, #tpu.memory_space<vmem>>, vector<1x32xf32>
    %18 = vector.broadcast %4 : vector<8x1xf32> to vector<8x32xf32>
    %19 = arith.subf %0, %18 : vector<8x32xf32>
    %20 = vector.broadcast %16 : vector<8x1xf32> to vector<8x32xf32>
    %21 = arith.mulf %19, %20 : vector<8x32xf32>
    %22 = vector.broadcast %17 : vector<1x32xf32> to vector<8x32xf32>
    %23 = arith.mulf %21, %22 : vector<8x32xf32>
    %c0_8 = arith.constant 0 : index
    %c0_9 = arith.constant 0 : index
    %24 = vector.load %arg1[%c0_8, %c0_9] : memref<8x32xf32, #tpu.memory_space<vmem>>, vector<8x32xf32>
    %25 = arith.addf %23, %24 : vector<8x32xf32>
    %c0_10 = arith.constant 0 : index
    %c0_11 = arith.constant 0 : index
    %26 = vector.load %arg4[%c0_10, %c0_11] : memref<8x32xf32, #tpu.memory_space<vmem>>, vector<8x32xf32>
    tpu.vector_store %arg4[%c0_10, %c0_11], %25 {strides = array<i32>} : memref<8x32xf32, #tpu.memory_space<vmem>>, vector<8x32xf32>,
    return
  }
  func.func @transform_0(%arg0: i32) -> (i32, i32) {
    %c0_i32 = arith.constant 0 : i32
    %c0_i32_0 = arith.constant 0 : i32
    return %arg0, %c0_i32 : i32, i32
  }
  func.func @transform_1(%arg0: i32) -> (i32, i32) {
    %c0_i32 = arith.constant 0 : i32
    %c0_i32_0 = arith.constant 0 : i32
    return %arg0, %c0_i32 : i32, i32
  }
  func.func @transform_2(%arg0: i32) -> (i32, i32) {
    %c0_i32 = arith.constant 0 : i32
    %c0_i32_0 = arith.constant 0 : i32
    %c0_i32_1 = arith.constant 0 : i32
    return %c0_i32, %c0_i32_0 : i32, i32
  }
  func.func @transform_3(%arg0: i32) -> (i32, i32) {
    %c0_i32 = arith.constant 0 : i32
    %c0_i32_0 = arith.constant 0 : i32
    return %arg0, %c0_i32 : i32, i32
  }
}

</mosaic_0001>

<bundles_post_ra>
// kernel: tpu_custom_call.1
= control target key start
LH: loop header
LB: loop body
LE: loop exit
PB: predicated region body
PF: predicated region fallthrough
CT: control target
= control target key end

     0   :  { %8 = vsyncpa [#allocation3], 0  ;;  %s803_s0 = inlined_call_operand.hbm [shape: f32[16,32], index: 0, kind: input, shape index: {}]   ;;  %s804_s1 = inlined_call_operand.hbm [shape: f32[16,32], index: 1, kind: input, shape index: {}]   ;;  %s805_s2 = inlined_call_operand.vmem [shape: f32[1,32], index: 2, kind: input, shape index: {}]   ;;  %s806_s3 = inlined_call_operand.hbm [shape: f32[16,32], index: 3, kind: output, shape index: {}]  }
   0x1   :  { %10 = vsyncpa [#allocation3 + $0x1], 0 }
   0x2   :  { %11 = vsyncpa [#allocation6], 0 }
   0x3   :  { %13 = vsyncpa [#allocation6 + $0x1], 0 }
   0x4   :  { %14 = vsyncpa [#allocation4], 0 }
   0x5   :  { %16 = vsyncpa [#allocation4 + $0x1], 0  ;;  %s583_s12 = smov 0   ;;  %s585_s13 = smov 0  }
   0x6   :  { %s587_s14 = smov 0   ;;  %s589_s15 = smov 0  }
   0x7 LB: > { %s604_s16 = sadd.s32 4294967295, %s558_s15   ;;  %s359_s17 = sadd.s32 4294967294, %s558_s15   ;;  %s558_s15 = sphi %s589_s15, %s825_s15   ;;  %s554_s14 = sphi %s587_s14, %s824_s14   ;;  %s550_s13 = sphi %s585_s13, %s823_s13   ;;  %s546_s12 = sphi %s583_s12, %s822_s12  }
   0x8   : > { %s608_s18 = sadd.s32 1, %s558_s15   ;;  %s29_s19 = sadd.s32 1, %s554_s14 }
   0x9   : > { %s26_s20 = ssub.s32 %s558_s15, %s608_s18  ;;  %p36_p0 = scmp.ne.s32.totalorder %s554_s14, %s550_s13 }
   0xa   : > { %p27_p1 = scmp.eq.s32.totalorder %s26_s20, 0  ;;  %p37_p2 = scmp.eq.s32.totalorder %s558_s15, 0 }
   0xb   : > { %p42_p3 = scmp.ne.s32.totalorder %s550_s13, %s546_s12  ;;  %p43_p4 = scmp.eq.s32.totalorder %s604_s16, 0 }
   0xc   : > { %s620_s21 = scalar_select %p27_p1, %s554_s14, %s29_s19  }
   0xd   : > { %p622_p5 = por %p37_p2, %p36_p0  ;;  %p626_p6 = por %p43_p4, %p42_p3 }
   0xe   : > { %p113_p7 = scmp.eq.s32.totalorder %s604_s16, 1  ;;  %p119_p8 = scmp.eq.s32.totalorder %s359_s17, 1 }
   0xf   : > { %s810_s23 = scalar_select %p626_p6, 1, 0 }
  0x10   : > { %p392_p10 = scmp.lt.s32.totalorder %s558_s15, 2  ;;  %p633_p11 = por %p113_p7, %p36_p0 }
  0x11   : > { %p637_p12 = por %p119_p8, %p42_p3  ;;  %s642_s26 = sand.u32 1, %s554_s14  }
  0x12   : > { %s811_s24 = scalar_select %p633_p11, 1, 0 }
  0x13   : > { %s812_s25 = scalar_select %p637_p12, 1, 0 }
  0x14   : > { %s363_s27 = sshll.u32 %s558_s15, 7  ;;  %s362_s28 = sshll.u32 %s642_s26, 3 }
  0x15   : > { %s651_s4 = scalar_lea.hbm %s803_s0, %s363_s27  ;;  %s146_s5 = scalar_lea.vmem [#allocation2], %s362_s28 }
  0x16   : > { %s153_s6 = sshll.u32 %s146_s5, 4  ;;  %p657_p13 = pnand %p392_p10, %p622_p5  ;;  %s661_s6 = int_to_ptr.vmem [resolvable:$true] %s153_s6 }
  0x17   : > { %s143_s8 = scalar_lea.sflag [#allocation3], %s642_s26  ;;  %s428_s9 = scalar_lea.hbm %s651_s4, 128 }
  0x18   : > { %p429_p2 = scmp.ne.s32.totalorder %s651_s4, %s428_s9  ;;  %p430_p3 = pneg %p657_p13 }
  0x19   : > { %s433_s17 = scalar_lea.hbm %s803_s0, 256  ;;  %p434_p5 = scmp.lt.u32.totalorder %s651_s4, %s803_s0 }
  0x1a   : > { %p431_p4 = pnand %p430_p3, %p429_p2  ;;  %p435_p8 = scmp.lt.u32.totalorder %s433_s17, %s428_s9 }
  0x1b   : > { %p437_p9 = scmp.lt.u32.totalorder %s428_s9, %s651_s4 }
  0x1c   : > { %p432_p7 = pneg %p431_p4  ;;  %p436_p10 = por %p435_p8, %p434_p5 }
  0x1e   : > { %p438_p0 = por %p437_p9, %p436_p10 }
  0x20   : > { %p439_p1 = pnand %p438_p0, %p432_p7 }
  0x22   : > { %442 = shalt.err (!%p439_p1)
}
  0x23   : > { %s443_s22 = scalar_lea.vmem %s661_s6, 128  ;;  %s560_s29 = smov [#allocation2]  }
  0x24   : > { %p444_p2 = scmp.ne.s32.totalorder %s661_s6, %s443_s22  ;;  %s448_s30 = sshll.u32 %s560_s29, 4  ;;  %s449_s30 = int_to_ptr.vmem [resolvable:$false] %s448_s30 }
  0x25   : > { %s450_s5 = scalar_lea.vmem %s449_s30, 256  ;;  %p451_p11 = scmp.lt.s32.totalorder %s661_s6, %s449_s30 }
  0x26   : > { %p446_p4 = pnand %p444_p2, %p430_p3  ;;  %p452_p5 = scmp.lt.s32.totalorder %s450_s5, %s443_s22 }
  0x28   : > { %p447_p12 = pneg %p446_p4  ;;  %p453_p8 = por %p452_p5, %p451_p11 }
  0x2a   : > { %p454_p9 = pnand %p453_p8, %p447_p12 }
  0x2c   : > { %457 = shalt.err (!%p454_p9)
}
  0x2d   : > { %384 = dma.hbm_to_vmem [thread:$0]  (!%p657_p13), %s651_s4, 128, %s661_s6, %s143_s8  }
  0x2e   : > { %p814_p0 = scmp.lt.s32.totalorder %s558_s15, 3  ;;  %p815_p1 = scmp.ge.s32.totalorder %s558_s15, 1 }
  0x2f   : > { %s704_s17 = scalar_lea.hbm %s804_s1, %s363_s27  ;;  %s164_s19 = scalar_lea.vmem [#allocation5], %s362_s28 }
  0x30   : > { %p695_p7 = pnand %p815_p1, %p814_p0  ;;  %s171_s20 = sshll.u32 %s164_s19, 4  ;;  %s172_s20 = int_to_ptr.vmem [resolvable:$true] %s171_s20 }
  0x31   : > { %s161_s4 = scalar_lea.sflag [#allocation6], %s642_s26  ;;  %s458_s6 = scalar_lea.hbm %s704_s17, 128 }
  0x32   : > { %s816_s9 = scalar_select %p695_p7, 1, 0 }
  0x33   : > { %p459_p11 = scmp.ne.s32.totalorder %s704_s17, %s458_s6  ;;  %s463_s27 = scalar_lea.hbm %s804_s1, 256 }
  0x34   : > { %p464_p2 = scmp.lt.u32.totalorder %s704_s17, %s804_s1  ;;  %p465_p4 = scmp.lt.u32.totalorder %s463_s27, %s458_s6 }
  0x35   : > { %p461_p12 = pnand %p459_p11, %p430_p3  ;;  %p467_p8 = scmp.lt.u32.totalorder %s458_s6, %s704_s17 }
  0x36   : > { %p466_p5 = por %p465_p4, %p464_p2 }
  0x37   : > { %p462_p10 = pneg %p461_p12 }
  0x38   : > { %p468_p9 = por %p467_p8, %p466_p5 }
  0x3a   : > { %p469_p0 = pnand %p468_p9, %p462_p10 }
  0x3c   : > { %472 = shalt.err (!%p469_p0)
}
  0x3d   : > { %s473_s26 = scalar_lea.vmem %s172_s20, 128  ;;  %s561_s28 = smov [#allocation5]  }
  0x3e   : > { %p474_p1 = scmp.ne.s32.totalorder %s172_s20, %s473_s26  ;;  %s478_s5 = sshll.u32 %s561_s28, 4  ;;  %s479_s5 = int_to_ptr.vmem [resolvable:$false] %s478_s5 }
  0x3f   : > { %s480_s10 = scalar_lea.vmem %s479_s5, 256  ;;  %p481_p6 = scmp.lt.s32.totalorder %s172_s20, %s479_s5 }
  0x40   : > { %p476_p11 = pnand %p474_p1, %p430_p3  ;;  %p482_p7 = scmp.lt.s32.totalorder %s480_s10, %s473_s26 }
  0x42   : > { %p477_p12 = pneg %p476_p11  ;;  %p483_p2 = por %p482_p7, %p481_p6 }
  0x44   : > { %p484_p4 = pnand %p483_p2, %p477_p12 }
  0x46   : > { %487 = shalt.err (!%p484_p4)
}
  0x47   : > { %387 = dma.hbm_to_vmem [thread:$0]  (!%p657_p13), %s704_s17, 128, %s172_s20, %s161_s4  }
  0x48   : > { %p817_p10 = scmp.ne.s32.totalorder %s816_s9, 0 }
  0x49   : > { %s731_s11 = sand.u32 (!%p817_p10), 1, %s550_s13   ;;  %p818_p6 = scmp.ne.s32.totalorder (!%p817_p10), %s810_s23, 0 }
  0x4a   : > { %180 = sbr.rel (%p817_p10) target bundleno = 271 (0x10f), region = 32  ;;  %s734_s19 = sshll.u32 (!%p817_p10), %s731_s11, 3 }
  0x4b   : > { %s183_s6 = scalar_lea.sflag (!%p817_p10), [#allocation3], %s731_s11  ;;  %s186_s8 = scalar_lea.vmem (!%p817_p10), [#allocation2], %s734_s19 }
  0x51   : > { %533 = dma.done.wait (%p818_p6), %s183_s6, 128  }
  0x52   : > { %535 = vsyncadd (%p818_p6), %s183_s6, 4294967168  ;;  %s192_s7 = scalar_lea.sflag [#allocation6], %s731_s11  ;;  %s195_s9 = scalar_lea.vmem [#allocation5], %s734_s19 }
  0x53   : > { %537 = dma.done.wait (%p818_p6), %s192_s7, 128  }
  0x54   : > { %539 = vsyncadd (%p818_p6), %s192_s7, 4294967168  ;;  %vm224_vm0 = vcmask 261120   ;;  %v223_v0 = vld [vmem:[%s195_s9] sm:$0xff]  ;;  %v370_v14 = vld [vmem:[%s805_s2] ss:$0 sm:$0xff]  ;;  %s372_s20 = sshll.u32 %s604_s16, 7 }
  0x55   : > { %v225_v1 = vsel %vm224_vm0, %v223_v0, 0.0  ;;  %v229_v2 = vmul.f32 %v223_v0, %v223_v0  ;;  %v249_v16 = vld [vmem:[%s186_s8] sm:$0xff]  ;;  %s222_s4 = scalar_lea.vmem [#allocation7], %s734_s19  ;;  %s758_s30 = scalar_lea.hbm %s806_s3, %s372_s20 }
  0x56   : > { %226 = vadd.xlane.f32.xlu0 %v225_v1  ;;  %s266_s22 = sshll.u32 %s222_s4, 4  ;;  %s253_s26 = scalar_lea.sflag [#allocation4], %s731_s11  ;;  %s760_s22 = int_to_ptr.vmem [resolvable:$true] %s266_s22 }
  0x57   : > { %v230_v3 = vsel %vm224_vm0, %v229_v2, 0.0  ;;  %s488_s28 = scalar_lea.vmem %s760_s22, 128  ;;  %p819_p3 = scmp.ne.s32.totalorder %s811_s24, 0 }
  0x58   : > { %p489_p13 = scmp.ne.s32.totalorder %s760_s22, %s488_s28  ;;  %s562_s16 = smov [#allocation7]  }
  0x59   : > { %s492_s5 = sshll.u32 %s562_s16, 4  ;;  %s493_s5 = int_to_ptr.vmem [resolvable:$false] %s492_s5 }
  0x5a   : > { %231 = vadd.xlane.f32.xlu0 %v230_v3  ;;  %p490_p7 = pnand %p489_p13, %p819_p3  ;;  %s494_s10 = scalar_lea.vmem %s493_s5, 256 }
  0x5b   : > { %p495_p8 = scmp.lt.s32.totalorder %s760_s22, %s493_s5  ;;  %p496_p9 = scmp.lt.s32.totalorder %s494_s10, %s488_s28 }
  0x5c   : > { %p491_p5 = pneg %p490_p7 }
  0x5d   : > { %p497_p0 = por %p496_p9, %p495_p8 }
  0x5f   : > { %p498_p1 = pnand %p497_p0, %p491_p5 }
  0xe3   : > { %v227_v4 = vpop.xlane.xlu0 %226 }
  0xe4   : > { %v228_v5 = vmul.f32 0.03125, %v227_v4 }
  0xe6   : > { %v234_v7 = vmul.f32 %v228_v5, %v228_v5  ;;  %v240_v12 = vsub.f32 %v223_v0, %v228_v5 }
  0xe7   : > { %v232_v6 = vpop.xlane.xlu0 %231 }
  0xe8   : > { %v233_v8 = vmul.f32 0.03125, %v232_v6 }
  0xea   : > { %v235_v9 = vsub.f32 %v233_v8, %v234_v7 }
  0xec   : > { %v236_v10 = vmax.f32 %v235_v9, 0.0 }
  0xee   : > { %v237_v11 = vadd.f32 1e-06, %v236_v10 }
  0xf0   : > { %426 = vrsqrt.f32 %v237_v11 }
  0xfa   : > { %v427_v13 = vpop.eup %426 }
  0xfb   : > { %v241_v15 = vmul.f32 %v427_v13, %v240_v12 }
  0xfd   : > { %v248_v17 = vmul.f32 %v370_v14, %v241_v15 }
  0xff   : > { %v250_v18 = vadd.f32 %v249_v16, %v248_v17 }
 0x101   : > { %251 = vst.msk [vmem:[%s222_s4] sm:$0xff] %vm224_vm0, %v250_v18 }
 0x102   : > { %501 = shalt.err (!%p498_p1)
}
 0x103   : > { %s502_s11 = scalar_lea.hbm %s758_s30, 128  ;;  %s506_s8 = scalar_lea.hbm %s806_s3, 256 }
 0x104   : > { %p503_p11 = scmp.ne.s32.totalorder %s758_s30, %s502_s11  ;;  %p507_p4 = scmp.lt.u32.totalorder %s758_s30, %s806_s3 }
 0x105   : > { %p508_p10 = scmp.lt.u32.totalorder %s506_s8, %s502_s11  ;;  %p510_p13 = scmp.lt.u32.totalorder %s502_s11, %s758_s30 }
 0x106   : > { %p504_p12 = pnand %p503_p11, %p819_p3 }
 0x107   : > { %p509_p6 = por %p508_p10, %p507_p4 }
 0x108   : > { %p505_p2 = pneg %p504_p12 }
 0x109   : > { %p511_p7 = por %p510_p13, %p509_p6 }
 0x10b   : > { %p512_p5 = pnand %p511_p7, %p505_p2 }
 0x10d   : > { %515 = shalt.err (!%p512_p5)
}
 0x10e   : > { %379 = dma.vmem_to_hbm [thread:$0]  (%p819_p3), %s760_s22, 128, %s758_s30, %s253_s26  }
 0x10f PF: > { %s278_s23 = sand.u32 1, %s546_s12   ;;  %p820_p8 = scmp.ne.s32.totalorder %s812_s25, 0 }
 0x110   : > { %p821_p9 = scmp.ge.s32.totalorder %s558_s15, 2  ;;  %s279_s17 = scalar_lea.sflag [#allocation4], %s278_s23 }
 0x112   : > { %p389_p0 = pnand %p821_p9, %p820_p8 }
 0x114   : > { %541 = dma.done.wait (!%p389_p0), %s279_s17, 128  }
 0x115   : > { %543 = vsyncadd (!%p389_p0), %s279_s17, 4294967168  ;;  %p19_p1 = scmp.ge.s32.totalorder %s608_s18, 4   ;;  %s822_s12 = smov %s550_s13 }
 0x116   : > { %s823_s13 = smov %s554_s14  ;;  %s824_s14 = smov %s620_s21 }
 0x117   : > { %s825_s15 = smov %s608_s18  ;;  %21 = sbr.rel (!%p19_p1) target bundleno = 7 (0x7), region = 90 }
 0x11e   :  { %284 = vsyncpa [#allocation3], 1 }
 0x11f   :  { %286 = vsyncpa [#allocation3 + $0x1], 1 }
 0x120   :  { %287 = vsyncpa [#allocation6], 1 }
 0x121   :  { %289 = vsyncpa [#allocation6 + $0x1], 1 }
 0x122   :  { %290 = vsyncpa [#allocation4], 1 }
 0x123   :  { %292 = vsyncpa [#allocation4 + $0x1], 1 }

</bundles_post_ra>
